<compile_context>
chip_gen: v5e
topology: v5e:2x2
jax: 0.10.0
libtpu: 0.0.40
codegen_flags: <defaults>
</compile_context>

<pallas_src>
import numpy as np
import jax
import jax.numpy as jnp
from jax import lax
from jax.experimental import pallas as pl
from jax.experimental.pallas import tpu as pltpu

# ---- model hyper-parameters (small, consistent with the module's cfg) -------
NUM_LAYERS = 2
NUM_NEURONS = 8
NUM_STATES = 32
INPUT_DIM = 32            # cfg.input_dim
HIDDEN_DIM = 64           # attention_hidden_dim
NUM_HEADS = 4
HEAD_DIM = HIDDEN_DIM // NUM_HEADS
BATCH = 2

BN = BATCH * NUM_NEURONS          # 16
NS = NUM_NEURONS * NUM_STATES     # 256
HBN = NUM_HEADS * BN              # 64

# ---- packed-constant layout (static, shared by prep & kernel) ---------------
_CW_ITEMS = [                       # wide pack, 256 lanes
    ("wp_flat",  INPUT_DIM, NS),
    ("lanemask", BN, NS),
    ("wqkv",     NUM_STATES, 3 * HIDDEN_DIM),
    ("bqkv",     BN, 3 * HIDDEN_DIM),
]
_CN_ITEMS = [                       # narrow pack, 64 lanes
    ("gathermat",   NS, NUM_STATES),
    ("selmat",      BN, BATCH),
    ("bp_split",    BN, NUM_STATES),
    ("repmat",      HBN, BN),
    ("headmask",    HBN, HIDDEN_DIM),
    ("bmask",       HBN, BN),
    ("collapsemat", BN, HBN),
    ("wo",          HIDDEN_DIM, NUM_STATES),
    ("bo",          BN, NUM_STATES),
    ("gate",        BN, NUM_STATES),
    ("mixblk",      BN, BN),
    ("wrt",         NUM_STATES, NUM_STATES),
]


def _round8(n):
    return ((n + 7) // 8) * 8


def _make_layout(items):
    layout, off = {}, 0
    for name, rows, cols in items:
        layout[name] = (off, rows, cols)
        off += _round8(rows)          # keep every region 8-sublane aligned
    return layout, off


_CW_LAYOUT, _CW_ROWS = _make_layout(_CW_ITEMS)
_CN_LAYOUT, _CN_ROWS = _make_layout(_CN_ITEMS)
CW_WIDTH = max(c for _, _, c in _CW_ITEMS)    # 256
CN_WIDTH = max(c for _, _, c in _CN_ITEMS)    # 64


def _pack(consts, layout, total_rows, width):
    buf = np.zeros((total_rows, width), np.float32)
    for name, (r0, rows, cols) in layout.items():
        a = np.asarray(consts[name], np.float32)
        assert a.shape == (rows, cols), (name, a.shape, (rows, cols))
        buf[r0:r0 + rows, :cols] = a
    return jnp.asarray(buf)


# ---- the kernel --------------------------------------------------------------
def enn_forward_kernel(x_ref, cw_ref, cn_ref, o_ref):
    """Single invocation, whole batch, all heads.

    x_ref  : (B, INPUT_DIM)
    cw_ref : (_CW_ROWS, 256)  packed wide constants
    cn_ref : (_CN_ROWS, 64)   packed narrow constants
    o_ref  : (B*N, S)
    """
    f32 = jnp.float32
    HID = HIDDEN_DIM

    def cw(name):
        r0, rows, cols = _CW_LAYOUT[name]
        return cw_ref[r0:r0 + rows, 0:cols]

    def cn(name):
        r0, rows, cols = _CN_LAYOUT[name]
        return cn_ref[r0:r0 + rows, 0:cols]

    # ---- _process_input: (B, IN) -> (B*N, S), matmul-only (no slice/concat) --
    xp = jnp.dot(x_ref[...], cw("wp_flat"), preferred_element_type=f32)        # (B, N*S)
    xr = jnp.dot(cn("selmat"), xp, preferred_element_type=f32)                 # (B*N, N*S)
    x = (jnp.dot(xr * cw("lanemask"), cn("gathermat"),
                 preferred_element_type=f32) + cn("bp_split"))                 # (B*N, S)

    # hoisted constants (loaded once, reused across the unrolled layer loop)
    wqkv, bqkv = cw("wqkv"), cw("bqkv")
    repmat, headmask, bmask = cn("repmat"), cn("headmask"), cn("bmask")
    collapsemat, wo, bo = cn("collapsemat"), cn("wo"), cn("bo")
    gate, mixblk = cn("gate"), cn("mixblk")

    for _ in range(NUM_LAYERS):
        # fused QKV for all heads + whole batch (scale & Q-bias folded at prep)
        qkv = jnp.dot(x, wqkv, preferred_element_type=f32) + bqkv              # (B*N, 3*HID)
        q = qkv[:, 0:HID]
        k = qkv[:, HID:2 * HID]
        v = qkv[:, 2 * HID:3 * HID]

        # all heads + whole batch in ONE score matmul via block-diagonal masking
        qstack = jnp.dot(repmat, q, preferred_element_type=f32) * headmask     # (H*B*N, HID)
        scores = lax.dot_general(qstack, k, (((1,), (1,)), ((), ())),
                                 preferred_element_type=f32) + bmask           # (H*B*N, B*N)
        m = jnp.max(scores, axis=-1, keepdims=True)
        e = jnp.exp(scores - m)
        probs = e * pl.reciprocal(jnp.sum(e, axis=-1, keepdims=True), approx=True)
        # (attention dropout is an eval-mode no-op)

        # context for all heads in ONE matmul, collapsed back to (B*N, HID)
        pv = jnp.dot(probs, v, preferred_element_type=f32) * headmask          # (H*B*N, HID)
        ctx = jnp.dot(collapsemat, pv, preferred_element_type=f32)             # (B*N, HID)
        att = jnp.dot(ctx, wo, preferred_element_type=f32) + bo                # (B*N, S)

        x = x + 0.5 * att              # residual with attention
        x = x * gate                   # sigmoid(entanglement) gating (prepped)
        x = jnp.dot(mixblk, x, preferred_element_type=f32)   # einsum('bns,nm->bms')

        # TODO(synk): neuron_states update chain (dynamic_sparsity_control,
        # state_decay, short-term buffers + temporal attention, autoencoder /
        # low-power collapse) only mutates internal buffers and never feeds
        # back into the returned tensor, so it is omitted from the kernel.

    # readout: Linear(num_states -> num_states, bias=False), pre-transposed
    o_ref[...] = jnp.dot(x, cn("wrt"), preferred_element_type=f32)


# ---- parameters --------------------------------------------------------------
def init_params(key):
    ks = jax.random.split(key, 8)
    wp = 0.1 * jax.random.normal(ks[0], (NUM_NEURONS, INPUT_DIM, NUM_STATES), jnp.float32)
    bp = 0.01 * jax.random.normal(ks[1], (NUM_NEURONS, NUM_STATES), jnp.float32)
    wq = 0.1 * jax.random.normal(ks[2], (NUM_HEADS, NUM_STATES, HEAD_DIM), jnp.float32)
    bq = jnp.zeros((NUM_HEADS, HEAD_DIM), jnp.float32)
    wk = 0.1 * jax.random.normal(ks[3], (NUM_HEADS, NUM_STATES, HEAD_DIM), jnp.float32)
    bk = jnp.zeros((NUM_HEADS, HEAD_DIM), jnp.float32)
    wv = 0.1 * jax.random.normal(ks[4], (NUM_HEADS, NUM_STATES, HEAD_DIM), jnp.float32)
    bv = jnp.zeros((NUM_HEADS, HEAD_DIM), jnp.float32)
    wo = 0.1 * jax.random.normal(ks[5], (NUM_HEADS, HEAD_DIM, NUM_STATES), jnp.float32)
    bo = jnp.zeros((1, NUM_STATES), jnp.float32)
    ent = jax.random.normal(ks[6], (NUM_NEURONS, NUM_STATES), jnp.float32)   # torch.randn
    mixing = jnp.eye(NUM_NEURONS, dtype=jnp.float32)                          # torch.eye
    wr = 0.1 * jax.random.normal(ks[7], (NUM_STATES, NUM_STATES), jnp.float32)
    return (wp, bp, wq, bq, wk, bk, wv, bv, wo, bo, ent, mixing, wr)


def prepare_params(params, batch):
    """One-time parameter preparation: fuse / transpose / fold scale+sigmoid,
    build the block-diagonal masking constants, pack everything into 2 buffers."""
    wp, bp, wq, bq, wk, bk, wv, bv, wo, bo, ent, mixing, wr = [np.asarray(p) for p in params]
    N, S, H, HD, HID, IN = NUM_NEURONS, NUM_STATES, NUM_HEADS, HEAD_DIM, HIDDEN_DIM, INPUT_DIM
    bn = batch * N
    scale = np.float32(1.0) / np.sqrt(np.float32(HD))

    wq_cat = wq.transpose(1, 0, 2).reshape(S, HID).astype(np.float32) * scale   # scale folded
    wk_cat = wk.transpose(1, 0, 2).reshape(S, HID).astype(np.float32)
    wv_cat = wv.transpose(1, 0, 2).reshape(S, HID).astype(np.float32)
    bqkv = np.concatenate([bq.reshape(-1) * scale, bk.reshape(-1), bv.reshape(-1)])

    eyeB = np.eye(batch, dtype=np.float32)
    eyeN = np.eye(N, dtype=np.float32)
    eyeS = np.eye(S, dtype=np.float32)
    eyeBN = np.eye(bn, dtype=np.float32)
    eyeH = np.eye(H, dtype=np.float32)

    consts = {
        # input-projection split (select -> lane-mask -> gather)
        "wp_flat":   wp.transpose(1, 0, 2).reshape(IN, N * S),
        "lanemask":  np.tile(np.kron(eyeN, np.ones((1, S), np.float32)), (batch, 1)),
        "selmat":    np.kron(eyeB, np.ones((N, 1), np.float32)),
        "gathermat": np.kron(np.ones((N, 1), np.float32), eyeS),
        "bp_split":  np.tile(bp.reshape(N, S), (batch, 1)),
        # attention
        "wqkv":        np.concatenate([wq_cat, wk_cat, wv_cat], axis=1),
        "bqkv":        np.tile(bqkv[None, :], (bn, 1)),
        "repmat":      np.tile(eyeBN, (H, 1)),
        "headmask":    np.kron(eyeH, np.ones((bn, HD), np.float32)),
        "bmask":       np.tile((1.0 - np.kron(eyeB, np.ones((N, N), np.float32))) * (-1e30), (H, 1)),
        "collapsemat": np.tile(eyeBN, (1, H)),
        "wo":          wo.reshape(HID, S),
        "bo":          np.tile(bo.reshape(1, S), (bn, 1)),
        # layer tail + readout
        "gate":   np.tile(1.0 / (1.0 + np.exp(-ent)), (batch, 1)),   # sigmoid folded at prep
        "mixblk": np.kron(eyeB, mixing.T),
        "wrt":    wr.T,
    }
    cw = _pack(consts, _CW_LAYOUT, _CW_ROWS, CW_WIDTH)
    cn = _pack(consts, _CN_LAYOUT, _CN_ROWS, CN_WIDTH)
    return {"cw": cw, "cn": cn, "batch": batch}


def enn_with_attention_forward(x, prepped):
    """x: [batch, INPUT_DIM] float32 -> [batch, NUM_NEURONS, NUM_STATES]."""
    b = x.shape[0]
    assert b == prepped["batch"], "prepared constants are baked for a fixed batch size"
    out = pl.pallas_call(
        enn_forward_kernel,
        out_shape=jax.ShapeDtypeStruct((b * NUM_NEURONS, NUM_STATES), jnp.float32),
        compiler_params=pltpu.CompilerParams(vmem_limit_bytes=2 * 1024 * 1024),
        cost_estimate=pl.CostEstimate(flops=2_000_000, transcendentals=2_176,
                                      bytes_accessed=450_000),
    )(x, prepped["cw"], prepped["cn"])
    # free XLA-level reshape back to the module's output layout
    return out.reshape(b, NUM_NEURONS, NUM_STATES)


# ---- pure-JAX reference of the same math (sanity check) ----------------------
def reference_forward(x, params):
    wp, bp, wq, bq, wk, bk, wv, bv, wo, bo, ent, mixing, wr = params
    xs = jnp.einsum('bd,nds->bns', x, wp) + bp[None]
    mask = jax.nn.sigmoid(ent)[None]
    scale = 1.0 / jnp.sqrt(jnp.float32(HEAD_DIM))
    for _ in range(NUM_LAYERS):
        att = jnp.zeros_like(xs)
        for h in range(NUM_HEADS):
            q = jnp.einsum('bns,sd->bnd', xs, wq[h]) + bq[h]
            k = jnp.einsum('bns,sd->bnd', xs, wk[h]) + bk[h]
            v = jnp.einsum('bns,sd->bnd', xs, wv[h]) + bv[h]
            p = jax.nn.softmax(jnp.einsum('bnd,bmd->bnm', q, k) * scale, axis=-1)
            att = att + jnp.einsum('bnm,bmd,ds->bns', p, v, wo[h])
        att = att + bo[None]
        xs = xs + 0.5 * att
        xs = xs * mask
        xs = jnp.einsum('bns,nm->bms', xs, mixing)
    return jnp.einsum('bns,ts->bnt', xs, wr)


if __name__ == "__main__":
    key = jax.random.PRNGKey(0)
    k_in, k_par = jax.random.split(key)
    x = jax.random.normal(k_in, (BATCH, INPUT_DIM), jnp.float32)
    params = init_params(k_par)
    prepped = prepare_params(params, BATCH)   # one-time param prep, not per call

    out = enn_with_attention_forward(x, prepped)
    out = jax.block_until_ready(out)

    ref = reference_forward(x, params)
    assert out.shape == (BATCH, NUM_NEURONS, NUM_STATES)
    # tolerance accounts for the approx (EUP) reciprocal in the softmax
    assert jnp.allclose(out, ref, rtol=2e-3, atol=2e-3), "mismatch vs JAX reference"

    print("KERNEL_OK")
</pallas_src>

<mosaic_0001>
module attributes {stable_mosaic.version = 11 : i64} {
  func.func @enn_forward_kernel(%arg0: memref<2x32xf32, #tpu.memory_space<vmem>>, %arg1: memref<96x256xf32, #tpu.memory_space<vmem>>, %arg2: memref<640x64xf32, #tpu.memory_space<vmem>>, %arg3: memref<16x32xf32, #tpu.memory_space<vmem>>) attributes {dimension_semantics = [], scalar_prefetch = 0 : i64, scratch_operands = 0 : i64, tpu.core_type = #tpu.core_type<tc>} {
    %c0 = arith.constant 0 : index
    %c0_0 = arith.constant 0 : index
    %0 = vector.load %arg0[%c0, %c0_0] : memref<2x32xf32, #tpu.memory_space<vmem>>, vector<2x32xf32>
    %c0_1 = arith.constant 0 : index
    %c0_2 = arith.constant 0 : index
    %1 = vector.load %arg1[%c0_1, %c0_2] : memref<96x256xf32, #tpu.memory_space<vmem>>, vector<32x256xf32>
    %cst = arith.constant dense<0.000000e+00> : vector<2x256xf32>
    %2 = tpu.matmul %0, %1, %cst {dimension_numbers = #tpu.dot_dimension_numbers<[1], [0], [0], [1], [0, 0, 1, 1], [], []>} : vector<2x32xf32>, vector<32x256xf32>, vector<2x256xf32> -> vector<2x256xf32>
    %c256 = arith.constant 256 : index
    %c0_3 = arith.constant 0 : index
    %3 = vector.load %arg2[%c256, %c0_3] : memref<640x64xf32, #tpu.memory_space<vmem>>, vector<16x2xf32>
    %cst_4 = arith.constant dense<0.000000e+00> : vector<16x256xf32>
    %4 = tpu.matmul %3, %2, %cst_4 {dimension_numbers = #tpu.dot_dimension_numbers<[1], [0], [0], [1], [0, 0, 1, 1], [], []>} : vector<16x2xf32>, vector<2x256xf32>, vector<16x256xf32> -> vector<16x256xf32>
    %c32 = arith.constant 32 : index
    %c0_5 = arith.constant 0 : index
    %5 = vector.load %arg1[%c32, %c0_5] : memref<96x256xf32, #tpu.memory_space<vmem>>, vector<16x256xf32>
    %6 = arith.mulf %4, %5 : vector<16x256xf32>
    %c0_6 = arith.constant 0 : index
    %c0_7 = arith.constant 0 : index
    %7 = vector.load %arg2[%c0_6, %c0_7] : memref<640x64xf32, #tpu.memory_space<vmem>>, vector<256x32xf32>
    %cst_8 = arith.constant dense<0.000000e+00> : vector<16x32xf32>
    %8 = tpu.matmul %6, %7, %cst_8 {dimension_numbers = #tpu.dot_dimension_numbers<[1], [0], [0], [1], [0, 0, 1, 1], [], []>} : vector<16x256xf32>, vector<256x32xf32>, vector<16x32xf32> -> vector<16x32xf32>
    %c272 = arith.constant 272 : index
    %c0_9 = arith.constant 0 : index
    %9 = vector.load %arg2[%c272, %c0_9] : memref<640x64xf32, #tpu.memory_space<vmem>>, vector<16x32xf32>
    %10 = arith.addf %8, %9 : vector<16x32xf32>
    %c48 = arith.constant 48 : index
    %c0_10 = arith.constant 0 : index
    %11 = vector.load %arg1[%c48, %c0_10] : memref<96x256xf32, #tpu.memory_space<vmem>>, vector<32x192xf32>
    %c80 = arith.constant 80 : index
    %c0_11 = arith.constant 0 : index
    %12 = vector.load %arg1[%c80, %c0_11] : memref<96x256xf32, #tpu.memory_space<vmem>>, vector<16x192xf32>
    %c288 = arith.constant 288 : index
    %c0_12 = arith.constant 0 : index
    %13 = vector.load %arg2[%c288, %c0_12] : memref<640x64xf32, #tpu.memory_space<vmem>>, vector<64x16xf32>
    %c352 = arith.constant 352 : index
    %c0_13 = arith.constant 0 : index
    %14 = vector.load %arg2[%c352, %c0_13] : memref<640x64xf32, #tpu.memory_space<vmem>>, vector<64x64xf32>
    %c416 = arith.constant 416 : index
    %c0_14 = arith.constant 0 : index
    %15 = vector.load %arg2[%c416, %c0_14] : memref<640x64xf32, #tpu.memory_space<vmem>>, vector<64x16xf32>
    %c480 = arith.constant 480 : index
    %c0_15 = arith.constant 0 : index
    %16 = vector.load %arg2[%c480, %c0_15] : memref<640x64xf32, #tpu.memory_space<vmem>>, vector<16x64xf32>
    %c496 = arith.constant 496 : index
    %c0_16 = arith.constant 0 : index
    %17 = vector.load %arg2[%c496, %c0_16] : memref<640x64xf32, #tpu.memory_space<vmem>>, vector<64x32xf32>
    %c560 = arith.constant 560 : index
    %c0_17 = arith.constant 0 : index
    %18 = vector.load %arg2[%c560, %c0_17] : memref<640x64xf32, #tpu.memory_space<vmem>>, vector<16x32xf32>
    %c576 = arith.constant 576 : index
    %c0_18 = arith.constant 0 : index
    %19 = vector.load %arg2[%c576, %c0_18] : memref<640x64xf32, #tpu.memory_space<vmem>>, vector<16x32xf32>
    %c592 = arith.constant 592 : index
    %c0_19 = arith.constant 0 : index
    %20 = vector.load %arg2[%c592, %c0_19] : memref<640x64xf32, #tpu.memory_space<vmem>>, vector<16x16xf32>
    %cst_20 = arith.constant dense<0.000000e+00> : vector<16x192xf32>
    %21 = tpu.matmul %10, %11, %cst_20 {dimension_numbers = #tpu.dot_dimension_numbers<[1], [0], [0], [1], [0, 0, 1, 1], [], []>} : vector<16x32xf32>, vector<32x192xf32>, vector<16x192xf32> -> vector<16x192xf32>
    %22 = arith.addf %21, %12 : vector<16x192xf32>
    %23 = vector.extract_strided_slice %22 {offsets = [0, 0], sizes = [16, 64], strides = [1, 1]} : vector<16x192xf32> to vector<16x64xf32>
    %24 = vector.extract_strided_slice %22 {offsets = [0, 64], sizes = [16, 64], strides = [1, 1]} : vector<16x192xf32> to vector<16x64xf32>
    %25 = vector.extract_strided_slice %22 {offsets = [0, 128], sizes = [16, 64], strides = [1, 1]} : vector<16x192xf32> to vector<16x64xf32>
    %cst_21 = arith.constant dense<0.000000e+00> : vector<64x64xf32>
    %26 = tpu.matmul %13, %23, %cst_21 {dimension_numbers = #tpu.dot_dimension_numbers<[1], [0], [0], [1], [0, 0, 1, 1], [], []>} : vector<64x16xf32>, vector<16x64xf32>, vector<64x64xf32> -> vector<64x64xf32>
    %27 = arith.mulf %26, %14 : vector<64x64xf32>
    %cst_22 = arith.constant dense<0.000000e+00> : vector<64x16xf32>
    %28 = tpu.matmul %27, %24, %cst_22 {dimension_numbers = #tpu.dot_dimension_numbers<[1], [1], [0], [0], [0, 0, 1, 0], [], []>} : vector<64x64xf32>, vector<16x64xf32>, vector<64x16xf32> -> vector<64x16xf32>
    %29 = arith.addf %28, %15 : vector<64x16xf32>
    %cst_23 = arith.constant dense<0xFF800000> : vector<64xf32>
    %30 = vector.multi_reduction <maximumf>, %29, %cst_23 [1] : vector<64x16xf32> to vector<64xf32>
    %31 = vector.shape_cast %30 : vector<64xf32> to vector<64x1xf32>
    %32 = vector.broadcast %31 : vector<64x1xf32> to vector<64x16xf32>
    %33 = arith.subf %29, %32 : vector<64x16xf32>
    %34 = math.exp %33 : vector<64x16xf32>
    %cst_24 = arith.constant dense<0.000000e+00> : vector<64xf32>
    %35 = vector.multi_reduction <add>, %34, %cst_24 [1] : vector<64x16xf32> to vector<64xf32>
    %36 = vector.shape_cast %35 : vector<64xf32> to vector<64x1xf32>
    %37 = tpu.reciprocal %36 {approx = true} : vector<64x1xf32> -> vector<64x1xf32>
    %38 = vector.broadcast %37 : vector<64x1xf32> to vector<64x16xf32>
    %39 = arith.mulf %34, %38 : vector<64x16xf32>
    %cst_25 = arith.constant dense<0.000000e+00> : vector<64x64xf32>
    %40 = tpu.matmul %39, %25, %cst_25 {dimension_numbers = #tpu.dot_dimension_numbers<[1], [0], [0], [1], [0, 0, 1, 1], [], []>} : vector<64x16xf32>, vector<16x64xf32>, vector<64x64xf32> -> vector<64x64xf32>
    %41 = arith.mulf %40, %14 : vector<64x64xf32>
    %cst_26 = arith.constant dense<0.000000e+00> : vector<16x64xf32>
    %42 = tpu.matmul %16, %41, %cst_26 {dimension_numbers = #tpu.dot_dimension_numbers<[1], [0], [0], [1], [0, 0, 1, 1], [], []>} : vector<16x64xf32>, vector<64x64xf32>, vector<16x64xf32> -> vector<16x64xf32>
    %cst_27 = arith.constant dense<0.000000e+00> : vector<16x32xf32>
    %43 = tpu.matmul %42, %17, %cst_27 {dimension_numbers = #tpu.dot_dimension_numbers<[1], [0], [0], [1], [0, 0, 1, 1], [], []>} : vector<16x64xf32>, vector<64x32xf32>, vector<16x32xf32> -> vector<16x32xf32>
    %44 = arith.addf %43, %18 : vector<16x32xf32>
    %cst_28 = arith.constant 5.000000e-01 : f32
    %45 = vector.broadcast %cst_28 : f32 to vector<16x32xf32>
    %46 = arith.mulf %45, %44 : vector<16x32xf32>
    %47 = arith.addf %10, %46 : vector<16x32xf32>
    %48 = arith.mulf %47, %19 : vector<16x32xf32>
    %cst_29 = arith.constant dense<0.000000e+00> : vector<16x32xf32>
    %49 = tpu.matmul %20, %48, %cst_29 {dimension_numbers = #tpu.dot_dimension_numbers<[1], [0], [0], [1], [0, 0, 1, 1], [], []>} : vector<16x16xf32>, vector<16x32xf32>, vector<16x32xf32> -> vector<16x32xf32>
    %cst_30 = arith.constant dense<0.000000e+00> : vector<16x192xf32>
    %50 = tpu.matmul %49, %11, %cst_30 {dimension_numbers = #tpu.dot_dimension_numbers<[1], [0], [0], [1], [0, 0, 1, 1], [], []>} : vector<16x32xf32>, vector<32x192xf32>, vector<16x192xf32> -> vector<16x192xf32>
    %51 = arith.addf %50, %12 : vector<16x192xf32>
    %52 = vector.extract_strided_slice %51 {offsets = [0, 0], sizes = [16, 64], strides = [1, 1]} : vector<16x192xf32> to vector<16x64xf32>
    %53 = vector.extract_strided_slice %51 {offsets = [0, 64], sizes = [16, 64], strides = [1, 1]} : vector<16x192xf32> to vector<16x64xf32>
    %54 = vector.extract_strided_slice %51 {offsets = [0, 128], sizes = [16, 64], strides = [1, 1]} : vector<16x192xf32> to vector<16x64xf32>
    %cst_31 = arith.constant dense<0.000000e+00> : vector<64x64xf32>
    %55 = tpu.matmul %13, %52, %cst_31 {dimension_numbers = #tpu.dot_dimension_numbers<[1], [0], [0], [1], [0, 0, 1, 1], [], []>} : vector<64x16xf32>, vector<16x64xf32>, vector<64x64xf32> -> vector<64x64xf32>
    %56 = arith.mulf %55, %14 : vector<64x64xf32>
    %cst_32 = arith.constant dense<0.000000e+00> : vector<64x16xf32>
    %57 = tpu.matmul %56, %53, %cst_32 {dimension_numbers = #tpu.dot_dimension_numbers<[1], [1], [0], [0], [0, 0, 1, 0], [], []>} : vector<64x64xf32>, vector<16x64xf32>, vector<64x16xf32> -> vector<64x16xf32>
    %58 = arith.addf %57, %15 : vector<64x16xf32>
    %cst_33 = arith.constant dense<0xFF800000> : vector<64xf32>
    %59 = vector.multi_reduction <maximumf>, %58, %cst_33 [1] : vector<64x16xf32> to vector<64xf32>
    %60 = vector.shape_cast %59 : vector<64xf32> to vector<64x1xf32>
    %61 = vector.broadcast %60 : vector<64x1xf32> to vector<64x16xf32>
    %62 = arith.subf %58, %61 : vector<64x16xf32>
    %63 = math.exp %62 : vector<64x16xf32>
    %cst_34 = arith.constant dense<0.000000e+00> : vector<64xf32>
    %64 = vector.multi_reduction <add>, %63, %cst_34 [1] : vector<64x16xf32> to vector<64xf32>
    %65 = vector.shape_cast %64 : vector<64xf32> to vector<64x1xf32>
    %66 = tpu.reciprocal %65 {approx = true} : vector<64x1xf32> -> vector<64x1xf32>
    %67 = vector.broadcast %66 : vector<64x1xf32> to vector<64x16xf32>
    %68 = arith.mulf %63, %67 : vector<64x16xf32>
    %cst_35 = arith.constant dense<0.000000e+00> : vector<64x64xf32>
    %69 = tpu.matmul %68, %54, %cst_35 {dimension_numbers = #tpu.dot_dimension_numbers<[1], [0], [0], [1], [0, 0, 1, 1], [], []>} : vector<64x16xf32>, vector<16x64xf32>, vector<64x64xf32> -> vector<64x64xf32>
    %70 = arith.mulf %69, %14 : vector<64x64xf32>
    %cst_36 = arith.constant dense<0.000000e+00> : vector<16x64xf32>
    %71 = tpu.matmul %16, %70, %cst_36 {dimension_numbers = #tpu.dot_dimension_numbers<[1], [0], [0], [1], [0, 0, 1, 1], [], []>} : vector<16x64xf32>, vector<64x64xf32>, vector<16x64xf32> -> vector<16x64xf32>
    %cst_37 = arith.constant dense<0.000000e+00> : vector<16x32xf32>
    %72 = tpu.matmul %71, %17, %cst_37 {dimension_numbers = #tpu.dot_dimension_numbers<[1], [0], [0], [1], [0, 0, 1, 1], [], []>} : vector<16x64xf32>, vector<64x32xf32>, vector<16x32xf32> -> vector<16x32xf32>
    %73 = arith.addf %72, %18 : vector<16x32xf32>
    %cst_38 = arith.constant 5.000000e-01 : f32
    %74 = vector.broadcast %cst_38 : f32 to vector<16x32xf32>
    %75 = arith.mulf %74, %73 : vector<16x32xf32>
    %76 = arith.addf %49, %75 : vector<16x32xf32>
    %77 = arith.mulf %76, %19 : vector<16x32xf32>
    %cst_39 = arith.constant dense<0.000000e+00> : vector<16x32xf32>
    %78 = tpu.matmul %20, %77, %cst_39 {dimension_numbers = #tpu.dot_dimension_numbers<[1], [0], [0], [1], [0, 0, 1, 1], [], []>} : vector<16x16xf32>, vector<16x32xf32>, vector<16x32xf32> -> vector<16x32xf32>
    %c608 = arith.constant 608 : index
    %c0_40 = arith.constant 0 : index
    %79 = vector.load %arg2[%c608, %c0_40] : memref<640x64xf32, #tpu.memory_space<vmem>>, vector<32x32xf32>
    %cst_41 = arith.constant dense<0.000000e+00> : vector<16x32xf32>
    %80 = tpu.matmul %78, %79, %cst_41 {dimension_numbers = #tpu.dot_dimension_numbers<[1], [0], [0], [1], [0, 0, 1, 1], [], []>} : vector<16x32xf32>, vector<32x32xf32>, vector<16x32xf32> -> vector<16x32xf32>
    %c0_42 = arith.constant 0 : index
    %c0_43 = arith.constant 0 : index
    %81 = vector.load %arg3[%c0_42, %c0_43] : memref<16x32xf32, #tpu.memory_space<vmem>>, vector<16x32xf32>
    tpu.vector_store %arg3[%c0_42, %c0_43], %80 {strides = array<i32>} : memref<16x32xf32, #tpu.memory_space<vmem>>, vector<16x32xf32>,
    return
  }
}

</mosaic_0001>

<bundles_post_ra>
// kernel: tpu_custom_call.1
= control target key start
LH: loop header
LB: loop body
LE: loop exit
PB: predicated region body
PF: predicated region fallthrough
CT: control target
= control target key end

     0   :  { %s2081_s0 = inlined_call_operand.vmem [shape: f32[2,32], index: 0, kind: input, shape index: {}]   ;;  %s2082_s1 = inlined_call_operand.vmem [shape: f32[96,256], index: 1, kind: input, shape index: {}]   ;;  %s2083_s2 = inlined_call_operand.vmem [shape: f32[640,64], index: 2, kind: input, shape index: {}]   ;;  %s2084_s3 = inlined_call_operand.hbm [shape: f32[16,32], index: 3, kind: output, shape index: {}]  }
   0x1   :  { %v22_v0 = vld [vmem:[%s2082_s1 + $0x30] sm:$0xff]  ;;  %v20_v1 = vld [vmem:[%s2082_s1 + $0x20] sm:$0xff]  ;;  %v23_v2 = vld [vmem:[%s2082_s1 + $0x38] sm:$0xff] }
   0x2   :  { %40 = vmatpush.msra.mxu0 %v22_v0  ;;  %60 = vmatpush.msra.mxu1 %v23_v2  ;;  %v21_v3 = vld [vmem:[%s2082_s1 + $0x28] sm:$0xff]  ;;  %v18_v4 = vld [vmem:[%s2082_s1 + $0x10] sm:$0xff]  ;;  %v19_v5 = vld [vmem:[%s2082_s1 + $0x18] sm:$0xff] }
   0x4   :  { %41 = vmatpush.msra.mxu0 %v20_v1  ;;  %61 = vmatpush.msra.mxu1 %v21_v3 }
   0x5   :  { %8 = vsyncpa [#allocation3], 0  ;;  %v16_v6 = vld [vmem:[%s2082_s1] sm:$0xff]  ;;  %v17_v7 = vld [vmem:[%s2082_s1 + $0x8] sm:$0xff]  ;;  %vm24_vm0 = vcmask 261120   ;;  %vm77_vm1 = vcmask 1041408  }
   0x6   :  { %42 = vmatpush.msra.mxu0 %v18_v4  ;;  %62 = vmatpush.msra.mxu1 %v19_v5  ;;  %v15_v8 = vld [vmem:[%s2081_s0] sm:$0x3]  ;;  %vm70_vm2 = vcmask 15360   ;;  %v153_v12 = vld [vmem:[%s2083_s2 + $0x78] sm:$0xff]  ;;  %v152_v14 = vld [vmem:[%s2083_s2 + $0x70] sm:$0xff]  ;;  %s1381_s22 = smov 64  }
   0x7   :  { %v68_v9 = vld [vmem:[%s2083_s2 + $0x100] sm:$0xff]  ;;  %v169_v13 = vld [vmem:[%s2083_s2 + $0xf8] sm:$0xff]  ;;  %v168_v15 = vld [vmem:[%s2083_s2 + $0xf0] sm:$0xff]  ;;  %vm322_vm3 = vcmask 130048   ;;  %vm402_vm4 = vcmask 523264   ;;  %s1382_s25 = smov [#allocation2]  }
   0x8   :  { %43 = vmatpush.msra.mxu0 %v16_v6  ;;  %63 = vmatpush.msra.mxu1 %v17_v7  ;;  %v151_v16 = vld [vmem:[%s2083_s2 + $0x68] sm:$0xff]  ;;  %v150_v18 = vld [vmem:[%s2083_s2 + $0x60] sm:$0xff]  ;;  %v149_v21 = vld [vmem:[%s2083_s2 + $0x58] sm:$0xff]  ;;  %s1183_s26 = sshll.u32 %s1382_s25, 4  ;;  %s1383_s29 = smov 128   ;;  %s1184_s26 = int_to_ptr.vmem [resolvable:$true] %s1183_s26 }
   0x9   :  { %1197 = vmatmul.msk.f32.vlgmr.msra.gmra.mxu0 %vm24_vm0, %v15_v8  ;;  %1198 = vmatmul.msk.f32.vlgmr.msra.gmra.mxu1 %vm24_vm0, %v15_v8  ;;  %v167_v17 = vld [vmem:[%s2083_s2 + $0xe8] sm:$0xff]  ;;  %v166_v19 = vld [vmem:[%s2083_s2 + $0xe0] sm:$0xff]  ;;  %v165_v22 = vld [vmem:[%s2083_s2 + $0xd8] sm:$0xff]  ;;  %s1384_s30 = smov 8  }
   0xa   :  { %v69_v20 = vld [vmem:[%s2083_s2 + $0x108] sm:$0xff]  ;;  %v148_v23 = vld [vmem:[%s2083_s2 + $0x50] sm:$0xff]  ;;  %v146_v27 = vld [vmem:[%s2083_s2 + $0x40] sm:$0xff] }
   0xb   :  { %v164_v24 = vld [vmem:[%s2083_s2 + $0xd0] sm:$0xff]  ;;  %v147_v25 = vld [vmem:[%s2083_s2 + $0x48] sm:$0xff]  ;;  %v162_v28 = vld [vmem:[%s2083_s2 + $0xc0] sm:$0xff] }
   0xc   :  { %v163_v26 = vld [vmem:[%s2083_s2 + $0xc8] sm:$0xff]  ;;  %v145_v29 = vld [vmem:[%s2083_s2 + $0x38] sm:$0xff]  ;;  %v144_v31 = vld [vmem:[%s2083_s2 + $0x30] sm:$0xff] }
   0xd   :  { %v161_v30 = vld [vmem:[%s2083_s2 + $0xb8] sm:$0xff]  ;;  %v160_v32 = vld [vmem:[%s2083_s2 + $0xb0] sm:$0xff]  ;;  %v143_v33 = vld [vmem:[%s2083_s2 + $0x28] sm:$0xff] }
   0xe   :  { %v159_v34 = vld [vmem:[%s2083_s2 + $0xa8] sm:$0xff]  ;;  %v142_v35 = vld [vmem:[%s2083_s2 + $0x20] sm:$0xff]  ;;  %v141_v37 = vld [vmem:[%s2083_s2 + $0x18] sm:$0xff] }
   0xf   :  { %v158_v36 = vld [vmem:[%s2083_s2 + $0xa0] sm:$0xff]  ;;  %v157_v38 = vld [vmem:[%s2083_s2 + $0x98] sm:$0xff]  ;;  %v140_v39 = vld [vmem:[%s2083_s2 + $0x10] sm:$0xff] }
  0x10   :  { %v139_v40 = vld [vmem:[%s2083_s2 + $0x8] sm:$0xff]  ;;  %v156_v41 = vld [vmem:[%s2083_s2 + $0x90] sm:$0xff]  ;;  %v138_v42 = vld [vmem:[%s2083_s2] sm:$0xff] }
  0x11   :  { %v155_v43 = vld [vmem:[%s2083_s2 + $0x88] sm:$0xff]  ;;  %v154_v44 = vld [vmem:[%s2083_s2 + $0x80] sm:$0xff]  ;;  %v1543_v45 = vld [vmem:[%s2082_s1 + $0x90] sm:$0xff] }
  0x12   :  { %v1548_v46 = vld [vmem:[%s2082_s1 + $0x98] sm:$0xff]  ;;  %288 = vmatpush.msrb.mxu0 %v1543_v45  ;;  %v130_v47 = vld [vmem:[%s2082_s1 + $0x40] sm:$0xff]  ;;  %v131_v48 = vld [vmem:[%s2082_s1 + $0x48] sm:$0xff] }
  0x13   :  { %311 = vmatpush.msrb.mxu1 %v1548_v46  ;;  %v132_v53 = vld [vmem:[%s2082_s1 + $0x50] sm:$0xff]  ;;  %v133_v54 = vld [vmem:[%s2082_s1 + $0x58] sm:$0xff]  ;;  %v222_v59 = vld [vmem:[%s2082_s1 + $0x80] sm:$0xff] }
  0x14   :  { %v1570_v60 = vld [vmem:[%s2082_s1 + $0x88] sm:$0xff]  ;;  %289 = vmatpush.msrb.mxu0 %v222_v59  ;;  %v220_v61 = vld [vmem:[%s2082_s1 + $0x70] sm:$0xff]  ;;  %v1579_v62 = vld [vmem:[%s2082_s1 + $0x78] sm:$0xff] }
  0x15   :  { %312 = vmatpush.msrb.mxu1 %v1570_v60  ;;  %v218_v63 = vld [vmem:[%s2082_s1 + $0x60] sm:$0xff]  ;;  %v1588_v0 = vld [vmem:[%s2082_s1 + $0x68] sm:$0xff]  ;;  %v170_v1 = vld [vmem:[%s2083_s2 + $0x110] sm:$0xff] }
  0x16   :  { %290 = vmatpush.msrb.mxu0 %v220_v61  ;;  %v171_v6 = vld [vmem:[%s2083_s2 + $0x118] sm:$0xff] }
  0x17   :  { %313 = vmatpush.msrb.mxu1 %v1579_v62 }
  0x18   :  { %291 = vmatpush.msrb.mxu0 %v218_v63 }
  0x19   :  { %314 = vmatpush.msrb.mxu1 %v1588_v0 }
  0x86   :  { %v45_v10 = vpop.f32.mrf.mxu0  ;;  %v65_v11 = vpop.f32.mrf.mxu1 }
  0x87   :  { %1199 = vmatpush.msk.msra.mxu2 %vm77_vm1, %v45_v10  ;;  %1202 = vmatpush.msk.msra.mxu3 %vm77_vm1, %v65_v11 }
  0x88   :  { %1200 = vmatmul.msk.f32.vlgmr.msra.gmra.mxu2 %vm70_vm2, %v68_v9  ;;  %1203 = vmatmul.msk.f32.vlgmr.msra.gmra.mxu3 %vm70_vm2, %v68_v9 }
  0x89   :  { %172 = vmatpush.msrb.mxu2 %v153_v12  ;;  %195 = vmatpush.msrb.mxu3 %v169_v13  ;;  %v1612_v13 = vld [vmem:[%s2082_s1 + $0xb0] sm:$0xff] }
  0x8b   :  { %173 = vmatpush.msrb.mxu2 %v152_v14  ;;  %196 = vmatpush.msrb.mxu3 %v168_v15  ;;  %v1617_v14 = vld [vmem:[%s2082_s1 + $0xb8] sm:$0xff]  ;;  %v1622_v15 = vld [vmem:[%s2082_s1 + $0xa8] sm:$0xff] }
  0x8d   :  { %174 = vmatpush.msrb.mxu2 %v151_v16  ;;  %197 = vmatpush.msrb.mxu3 %v167_v17 }
  0x8f   :  { %175 = vmatpush.msrb.mxu2 %v150_v18  ;;  %198 = vmatpush.msrb.mxu3 %v166_v19  ;;  %v1627_v18 = vld [vmem:[%s2082_s1 + $0xa0] sm:$0xff] }
  0x90   :  { %1201 = vmatmul.msk.f32.gmra.mxu2 %vm70_vm2, %v69_v20  ;;  %1204 = vmatmul.msk.f32.gmra.mxu3 %vm70_vm2, %v69_v20 }
  0x91   :  { %176 = vmatpush.msrb.mxu2 %v149_v21  ;;  %199 = vmatpush.msrb.mxu3 %v165_v22 }
  0x93   :  { %177 = vmatpush.msrb.mxu2 %v148_v23  ;;  %200 = vmatpush.msrb.mxu3 %v164_v24  ;;  %v1637_v23 = vld [vmem:[%s2083_s2 + $0x120] sm:$0xff]  ;;  %v1646_v24 = vld [vmem:[%s2083_s2 + $0x128] sm:$0xff] }
  0x95   :  { %178 = vmatpush.msrb.mxu2 %v147_v25  ;;  %201 = vmatpush.msrb.mxu3 %v163_v26  ;;  %v1653_v25 = vld [vmem:[%s2083_s2 + $0x130] sm:$0xff]  ;;  %v1660_v26 = vld [vmem:[%s2083_s2 + $0x138] sm:$0xff] }
  0x97   :  { %179 = vmatpush.msrb.mxu2 %v146_v27  ;;  %202 = vmatpush.msrb.mxu3 %v162_v28  ;;  %v1667_v27 = vld [vmem:[%s2083_s2 + $0x140] sm:$0xff]  ;;  %v1674_v28 = vld [vmem:[%s2083_s2 + $0x148] sm:$0xff] }
  0x99   :  { %180 = vmatpush.msrb.mxu2 %v145_v29  ;;  %203 = vmatpush.msrb.mxu3 %v161_v30  ;;  %v1681_v29 = vld [vmem:[%s2083_s2 + $0x150] sm:$0xff]  ;;  %v1688_v30 = vld [vmem:[%s2083_s2 + $0x158] sm:$0xff] }
  0x9b   :  { %181 = vmatpush.msrb.mxu2 %v144_v31  ;;  %204 = vmatpush.msrb.mxu3 %v160_v32 }
  0x9d   :  { %182 = vmatpush.msrb.mxu2 %v143_v33  ;;  %205 = vmatpush.msrb.mxu3 %v159_v34  ;;  %v1699_v33 = vld [vmem:[%s2083_s2 + $0x160] sm:$0xff] }
  0x9f   :  { %183 = vmatpush.msrb.mxu2 %v142_v35  ;;  %206 = vmatpush.msrb.mxu3 %v158_v36  ;;  %v1708_v36 = vld [vmem:[%s2083_s2 + $0x168] sm:$0xff] }
  0xa1   :  { %184 = vmatpush.msrb.mxu2 %v141_v37  ;;  %207 = vmatpush.msrb.mxu3 %v157_v38 }
  0xa3   :  { %185 = vmatpush.msrb.mxu2 %v140_v39  ;;  %208 = vmatpush.msrb.mxu3 %v156_v41  ;;  %v1715_v39 = vld [vmem:[%s2083_s2 + $0x170] sm:$0xff] }
  0xa5   :  { %186 = vmatpush.msrb.mxu2 %v139_v40  ;;  %209 = vmatpush.msrb.mxu3 %v155_v43 }
  0xa7   :  { %187 = vmatpush.msrb.mxu2 %v138_v42  ;;  %210 = vmatpush.msrb.mxu3 %v154_v44  ;;  %v1722_v42 = vld [vmem:[%s2083_s2 + $0x178] sm:$0xff] }
 0x10b   :  { %v101_v49 = vpop.f32.mrf.mxu2  ;;  %v124_v50 = vpop.f32.mrf.mxu3 }
 0x10c   :  { %v134_v51 = vmul.f32 %v130_v47, %v101_v49  ;;  %v135_v52 = vmul.f32 %v131_v48, %v124_v50  ;;  %v1736_v48 = vld [vmem:[%s2083_s2 + $0x188] sm:$0xff] }
 0x10e   :  { %188 = vmatmul.f32.vlgmr.msrb.gmra.mxu2 %v134_v51  ;;  %211 = vmatmul.f32.vlgmr.msrb.gmra.mxu3 %v135_v52  ;;  %v1743_v51 = vld [vmem:[%s2083_s2 + $0x190] sm:$0xff] }
 0x113   :  { %v104_v55 = vpop.f32.mrf.mxu2  ;;  %v127_v56 = vpop.f32.mrf.mxu3 }
 0x114   :  { %v136_v57 = vmul.f32 %v132_v53, %v104_v55  ;;  %v137_v58 = vmul.f32 %v133_v54, %v127_v56  ;;  %v1750_v54 = vld [vmem:[%s2083_s2 + $0x198] sm:$0xff] }
 0x116   :  { %191 = vmatmul.f32.gmra.mxu2 %v136_v57  ;;  %214 = vmatmul.f32.gmra.mxu3 %v137_v58  ;;  %v1757_v57 = vld [vmem:[%s2083_s2 + $0x1a0] sm:$0xff] }
 0x191   :  { %v189_v2 = vpop.f32.mrf.mxu2  ;;  %v212_v3 = vpop.f32.mrf.mxu3 }
 0x192   :  { %v190_v4 = vadd.f32 %v189_v2, %v170_v1  ;;  %v1771_v1 = vld [vmem:[%s2083_s2 + $0x1b0] sm:$0xff] }
 0x194   :  { %v1594_v5 = vadd.f32 %v212_v3, %v190_v4 }
 0x196   :  { %1205 = vmatmul.msk.f32.vlgmr.msrb.gmra.mxu0 %vm24_vm0, %v1594_v5  ;;  %1207 = vmatmul.msk.f32.vlgmr.msrb.gmra.mxu1 %vm24_vm0, %v1594_v5 }
 0x199   :  { %v192_v7 = vpop.f32.mrf.mxu2  ;;  %v215_v8 = vpop.f32.mrf.mxu3 }
 0x19a   :  { %v193_v9 = vadd.f32 %v192_v7, %v171_v6  ;;  %v1778_v6 = vld [vmem:[%s2083_s2 + $0x1b8] sm:$0xff] }
 0x19c   :  { %v1603_v10 = vadd.f32 %v215_v8, %v193_v9 }
 0x19e   :  { %1206 = vmatmul.msk.f32.gmra.mxu0 %vm24_vm0, %v1603_v10  ;;  %1208 = vmatmul.msk.f32.gmra.mxu1 %vm24_vm0, %v1603_v10 }
 0x213   :  { %v293_v11 = vpop.f32.mrf.mxu0  ;;  %v316_v12 = vpop.f32.mrf.mxu1 }
 0x214   :  { %v317_v21 = vadd.f32 %v316_v12, %v1622_v15  ;;  %v294_v22 = vadd.f32 %v293_v11, %v1627_v18  ;;  %v1785_v11 = vld [vmem:[%s2083_s2 + $0x1c0] sm:$0xff] }
 0x21b   :  { %v296_v16 = vpop.f32.mrf.mxu0  ;;  %v319_v17 = vpop.f32.mrf.mxu1 }
 0x21c   :  { %v297_v19 = vadd.f32 %v296_v16, %v1612_v13  ;;  %v320_v20 = vadd.f32 %v319_v17, %v1617_v14 }
 0x21e   :  { %598 = vmatpush.msra.mxu2 %v320_v20  ;;  %400 = vrot.lane.b32.xlu0 %v297_v19, %s1381_s22 }
 0x21f   :  { %361 = vmatpush.msra.mxu0 %v297_v19  ;;  %v1792_v19 = vld [vmem:[%s2083_s2 + $0x1c8] sm:$0xff] }
 0x220   :  { %599 = vmatpush.msra.mxu2 %v317_v21 }
 0x221   :  { %362 = vmatpush.msra.mxu0 %v294_v22 }
 0x222   :  { %1209 = vmatmul.msk.f32.vlgmr.msra.gmra.mxu0 %vm322_vm3, %v1637_v23 }
 0x223   :  { %744 = vmatpush.msrb.mxu0 %v1543_v45  ;;  %v1729_v45 = vld [vmem:[%s2083_s2 + $0x180] sm:$0xff] }
 0x225   :  { %745 = vmatpush.msrb.mxu0 %v222_v59 }
 0x226   :  { %398 = vrot.lane.b32.xlu0 %v294_v22, %s1381_s22 }
 0x227   :  { %746 = vmatpush.msrb.mxu0 %v220_v61  ;;  %v1764_v61 = vld [vmem:[%s2083_s2 + $0x1a8] sm:$0xff] }
 0x229   :  { %747 = vmatpush.msrb.mxu0 %v218_v63 }
 0x22a   :  { %1210 = vmatmul.msk.f32.gmra.mxu0 %vm322_vm3, %v1646_v24 }
 0x232   :  { %1211 = vmatmul.msk.f32.gmra.mxu0 %vm322_vm3, %v1653_v25 }
 0x23a   :  { %1212 = vmatmul.msk.f32.gmra.mxu0 %vm322_vm3, %v1660_v26 }
 0x242   :  { %1213 = vmatmul.msk.f32.gmra.mxu0 %vm322_vm3, %v1667_v27 }
 0x24a   :  { %1214 = vmatmul.msk.f32.gmra.mxu0 %vm322_vm3, %v1674_v28 }
 0x252   :  { %1215 = vmatmul.msk.f32.gmra.mxu0 %vm322_vm3, %v1681_v29 }
 0x25a   :  { %1216 = vmatmul.msk.f32.gmra.mxu0 %vm322_vm3, %v1688_v30 }
 0x290   :  { %v401_v31 = vpop.permute.xlu0 %400 }
 0x291   :  { %1217 = vmatpush.xpose.msk.msra.mxu1 %vm402_vm4, %v401_v31  ;;  %v1799_v31 = vld [vmem:[%s2083_s2 + $0x1d0] sm:$0xff] }
 0x298   :  { %v399_v32 = vpop.permute.xlu0 %398 }
 0x299   :  { %1218 = vmatpush.xpose.msk.msra.mxu1 %vm402_vm4, %v399_v32 }
 0x29d   :  { %767 = vmatpush.msrb.mxu1 %v1548_v46 }
 0x29f   :  { %768 = vmatpush.msrb.mxu1 %v1570_v60  ;;  %v364_v34 = vpop.f32.mrf.mxu0 }
 0x2a0   :  { %v388_v35 = vmul.f32 %v364_v34, %v1699_v33 }
 0x2a1   :  { %769 = vmatpush.msrb.mxu1 %v1579_v62 }
 0x2a2   :  { %1219 = vmatmul.msk.f32.vlgmr.msra.gmra.mxu1 %vm402_vm4, %v388_v35 }
 0x2a3   :  { %770 = vmatpush.msrb.mxu1 %v1588_v0 }
 0x2a7   :  { %v367_v37 = vpop.f32.mrf.mxu0 }
 0x2a8   :  { %v389_v38 = vmul.f32 %v367_v37, %v1708_v36  ;;  %v1806_v37 = vld [vmem:[%s2083_s2 + $0x1d8] sm:$0xff] }
 0x2aa   :  { %1220 = vmatmul.msk.f32.gmra.mxu1 %vm402_vm4, %v389_v38 }
 0x2af   :  { %v370_v40 = vpop.f32.mrf.mxu0 }
 0x2b0   :  { %v390_v41 = vmul.f32 %v370_v40, %v1715_v39 }
 0x2b2   :  { %1221 = vmatmul.msk.f32.gmra.mxu1 %vm402_vm4, %v390_v41 }
 0x2b7   :  { %v373_v43 = vpop.f32.mrf.mxu0 }
 0x2b8   :  { %v391_v44 = vmul.f32 %v373_v43, %v1722_v42 }
 0x2ba   :  { %1222 = vmatmul.msk.f32.gmra.mxu1 %vm402_vm4, %v391_v44 }
 0x2bf   :  { %v376_v46 = vpop.f32.mrf.mxu0 }
 0x2c0   :  { %v392_v47 = vmul.f32 %v376_v46, %v1729_v45 }
 0x2c2   :  { %1223 = vmatmul.msk.f32.gmra.mxu1 %vm402_vm4, %v392_v47 }
 0x2c7   :  { %v379_v49 = vpop.f32.mrf.mxu0 }
 0x2c8   :  { %v393_v50 = vmul.f32 %v379_v49, %v1736_v48 }
 0x2ca   :  { %1224 = vmatmul.msk.f32.gmra.mxu1 %vm402_vm4, %v393_v50 }
 0x2cf   :  { %v382_v52 = vpop.f32.mrf.mxu0 }
 0x2d0   :  { %v394_v53 = vmul.f32 %v382_v52, %v1743_v51 }
 0x2d2   :  { %1225 = vmatmul.msk.f32.gmra.mxu1 %vm402_vm4, %v394_v53 }
 0x2d7   :  { %v385_v55 = vpop.f32.mrf.mxu0 }
 0x2d8   :  { %v395_v56 = vmul.f32 %v385_v55, %v1750_v54 }
 0x2da   :  { %1226 = vmatmul.msk.f32.gmra.mxu1 %vm402_vm4, %v395_v56 }
 0x31f   :  { %v448_v58 = vpop.f32.mrf.mxu1 }
 0x320   :  { %v449_v59 = vadd.f32 %v448_v58, %v1757_v57 }
 0x322   :  { %v472_v60 = vsel %vm322_vm3, %v449_v59, -inf }
 0x323   :  { %473 = vmax.xlane.f32.xlu1 %v472_v60 }
 0x327   :  { %v451_v62 = vpop.f32.mrf.mxu1 }
 0x328   :  { %v452_v63 = vadd.f32 %v451_v62, %v1764_v61 }
 0x32a   :  { %v475_v0 = vsel %vm322_vm3, %v452_v63, -inf }
 0x32b   :  { %476 = vmax.xlane.f32.xlu1 %v475_v0 }
 0x32f   :  { %v454_v2 = vpop.f32.mrf.mxu1 }
 0x330   :  { %v455_v3 = vadd.f32 %v454_v2, %v1771_v1 }
 0x332   :  { %v478_v4 = vsel %vm322_vm3, %v455_v3, -inf }
 0x333   :  { %479 = vmax.xlane.f32.xlu2 %v478_v4 }
 0x337   :  { %v457_v7 = vpop.f32.mrf.mxu1 }
 0x338   :  { %v458_v8 = vadd.f32 %v457_v7, %v1778_v6 }
 0x33a   :  { %v481_v9 = vsel %vm322_vm3, %v458_v8, -inf }
 0x33b   :  { %482 = vmax.xlane.f32.xlu2 %v481_v9 }
 0x33f   :  { %v460_v12 = vpop.f32.mrf.mxu1 }
 0x340   :  { %v461_v16 = vadd.f32 %v460_v12, %v1785_v11 }
 0x342   :  { %v484_v17 = vsel %vm322_vm3, %v461_v16, -inf }
 0x343   :  { %485 = vmax.xlane.f32.xlu0 %v484_v17 }
 0x347   :  { %v463_v20 = vpop.f32.mrf.mxu1 }
 0x348   :  { %v464_v21 = vadd.f32 %v463_v20, %v1792_v19 }
 0x34a   :  { %v487_v22 = vsel %vm322_vm3, %v464_v21, -inf }
 0x34b   :  { %488 = vmax.xlane.f32.xlu1 %v487_v22 }
 0x34f   :  { %v466_v32 = vpop.f32.mrf.mxu1 }
 0x350   :  { %v467_v34 = vadd.f32 %v466_v32, %v1799_v31 }
 0x352   :  { %v490_v35 = vsel %vm322_vm3, %v467_v34, -inf }
 0x353   :  { %491 = vmax.xlane.f32.xlu2 %v490_v35 }
 0x357   :  { %v469_v38 = vpop.f32.mrf.mxu1 }
 0x358   :  { %v470_v40 = vadd.f32 %v469_v38, %v1806_v37 }
 0x35a   :  { %v493_v41 = vsel %vm322_vm3, %v470_v40, -inf }
 0x35b   :  { %494 = vmax.xlane.f32.xlu2 %v493_v41 }
 0x396   :  { %v474_v43 = vpop.xlane.xlu1 %473 }
 0x397   :  { %v496_v44 = vsub.f32 %v449_v59, %v474_v43 }
 0x399   :  { %v504_v46 = vmul.f32 1.442695, %v496_v44 }
 0x39b   :  { %1291 = vpow2.f32 %v504_v46 }
 0x39e   :  { %v477_v47 = vpop.xlane.xlu1 %476 }
 0x39f   :  { %v497_v49 = vsub.f32 %v452_v63, %v477_v47 }
 0x3a1   :  { %v1292_v50 = vpop.eup %1291  ;;  %v506_v52 = vmul.f32 1.442695, %v497_v49 }
 0x3a2   :  { %v520_v53 = vsel %vm322_vm3, %v1292_v50, 0.0 }
 0x3a3   :  { %1293 = vpow2.f32 %v506_v52  ;;  %521 = vadd.xlane.f32.xlu1 %v520_v53 }
 0x3a6   :  { %v480_v55 = vpop.xlane.xlu2 %479 }
 0x3a7   :  { %v498_v56 = vsub.f32 %v455_v3, %v480_v55 }
 0x3a9   :  { %v1294_v58 = vpop.eup %1293  ;;  %v508_v60 = vmul.f32 1.442695, %v498_v56 }
 0x3aa   :  { %v523_v62 = vsel %vm322_vm3, %v1294_v58, 0.0 }
 0x3ab   :  { %1295 = vpow2.f32 %v508_v60  ;;  %524 = vadd.xlane.f32.xlu1 %v523_v62 }
 0x3ae   :  { %v483_v0 = vpop.xlane.xlu2 %482 }
 0x3af   :  { %v499_v59 = vsub.f32 %v458_v8, %v483_v0 }
 0x3b1   :  { %v1296_v2 = vpop.eup %1295  ;;  %v510_v4 = vmul.f32 1.442695, %v499_v59 }
 0x3b2   :  { %v526_v63 = vsel %vm322_vm3, %v1296_v2, 0.0 }
 0x3b3   :  { %1297 = vpow2.f32 %v510_v4  ;;  %527 = vadd.xlane.f32.xlu2 %v526_v63 }
 0x3b6   :  { %v486_v7 = vpop.xlane.xlu0 %485 }
 0x3b7   :  { %v500_v9 = vsub.f32 %v461_v16, %v486_v7 }
 0x3b9   :  { %v1298_v12 = vpop.eup %1297  ;;  %v512_v17 = vmul.f32 1.442695, %v500_v9 }
 0x3ba   :  { %v529_v3 = vsel %vm322_vm3, %v1298_v12, 0.0 }
 0x3bb   :  { %1299 = vpow2.f32 %v512_v17  ;;  %530 = vadd.xlane.f32.xlu1 %v529_v3 }
 0x3be   :  { %v489_v20 = vpop.xlane.xlu1 %488 }
 0x3bf   :  { %v501_v22 = vsub.f32 %v464_v21, %v489_v20 }
 0x3c1   :  { %v1300_v32 = vpop.eup %1299  ;;  %v514_v35 = vmul.f32 1.442695, %v501_v22 }
 0x3c2   :  { %v532_v8 = vsel %vm322_vm3, %v1300_v32, 0.0 }
 0x3c3   :  { %1301 = vpow2.f32 %v514_v35  ;;  %533 = vadd.xlane.f32.xlu2 %v532_v8 }
 0x3c6   :  { %v492_v38 = vpop.xlane.xlu2 %491 }
 0x3c7   :  { %v502_v41 = vsub.f32 %v467_v34, %v492_v38 }
 0x3c9   :  { %v1302_v43 = vpop.eup %1301  ;;  %v516_v44 = vmul.f32 1.442695, %v502_v41 }
 0x3ca   :  { %v535_v16 = vsel %vm322_vm3, %v1302_v43, 0.0 }
 0x3cb   :  { %1303 = vpow2.f32 %v516_v44  ;;  %536 = vadd.xlane.f32.xlu1 %v535_v16 }
 0x3ce   :  { %v495_v46 = vpop.xlane.xlu2 %494 }
 0x3cf   :  { %v503_v47 = vsub.f32 %v470_v40, %v495_v46 }
 0x3d1   :  { %v1304_v49 = vpop.eup %1303  ;;  %v518_v52 = vmul.f32 1.442695, %v503_v47 }
 0x3d2   :  { %v538_v21 = vsel %vm322_vm3, %v1304_v49, 0.0 }
 0x3d3   :  { %1305 = vpow2.f32 %v518_v52  ;;  %539 = vadd.xlane.f32.xlu2 %v538_v21 }
 0x3d9   :  { %v1306_v53 = vpop.eup %1305 }
 0x3da   :  { %v541_v55 = vsel %vm322_vm3, %v1306_v53, 0.0 }
 0x3db   :  { %542 = vadd.xlane.f32.xlu1 %v541_v55 }
 0x416   :  { %v522_v56 = vpop.xlane.xlu1 %521 }
 0x417   :  { %1307 = vrcp.f32 %v522_v56 }
 0x41d   :  { %v1308_v34 = vpop.eup %1307 }
 0x41e   :  { %v552_v60 = vmul.f32 %v1308_v34, %v1292_v50  ;;  %v525_v62 = vpop.xlane.xlu1 %524 }
 0x41f   :  { %1309 = vrcp.f32 %v525_v62 }
 0x420   :  { %1227 = vmatmul.msk.f32.vlgmr.msra.gmra.mxu2 %vm322_vm3, %v552_v60 }
 0x425   :  { %v1310_v0 = vpop.eup %1309 }
 0x426   :  { %v528_v40 = vpop.xlane.xlu2 %527  ;;  %v553_v59 = vmul.f32 %v1310_v0, %v1294_v58 }
 0x427   :  { %1311 = vrcp.f32 %v528_v40 }
 0x428   :  { %1228 = vmatmul.msk.f32.gmra.mxu2 %vm322_vm3, %v553_v59  ;;  %v1837_v59 = vld [vmem:[%s2083_s2 + $0x1e0] sm:$0xff] }
 0x42d   :  { %v1312_v4 = vpop.eup %1311 }
 0x42e   :  { %v531_v63 = vpop.xlane.xlu1 %530  ;;  %v554_v7 = vmul.f32 %v1312_v4, %v1296_v2  ;;  %v1842_v4 = vld [vmem:[%s2083_s2 + $0x228] sm:$0xff] }
 0x42f   :  { %1313 = vrcp.f32 %v531_v63  ;;  %v1849_v63 = vld [vmem:[%s2083_s2 + $0x220] sm:$0xff] }
 0x430   :  { %1229 = vmatmul.msk.f32.gmra.mxu2 %vm322_vm3, %v554_v7  ;;  %v1855_v7 = vld [vmem:[%s2083_s2 + $0x218] sm:$0xff] }
 0x435   :  { %v1314_v9 = vpop.eup %1313 }
 0x436   :  { %v534_v17 = vpop.xlane.xlu2 %533  ;;  %v555_v3 = vmul.f32 %v1314_v9, %v1298_v12  ;;  %v1861_v9 = vld [vmem:[%s2083_s2 + $0x210] sm:$0xff] }
 0x437   :  { %1315 = vrcp.f32 %v534_v17  ;;  %v1866_v17 = vld [vmem:[%s2083_s2 + $0x1e8] sm:$0xff] }
 0x438   :  { %1230 = vmatmul.msk.f32.gmra.mxu2 %vm322_vm3, %v555_v3  ;;  %v1872_v3 = vld [vmem:[%s2083_s2 + $0x208] sm:$0xff] }
 0x43d   :  { %v1316_v50 = vpop.eup %1315 }
 0x43e   :  { %v537_v20 = vpop.xlane.xlu1 %536  ;;  %v556_v22 = vmul.f32 %v1316_v50, %v1300_v32  ;;  %v1880_v50 = vld [vmem:[%s2083_s2 + $0x200] sm:$0xff] }
 0x43f   :  { %1317 = vrcp.f32 %v537_v20  ;;  %v1886_v20 = vld [vmem:[%s2083_s2 + $0x1f8] sm:$0xff] }
 0x440   :  { %1231 = vmatmul.msk.f32.gmra.mxu2 %vm322_vm3, %v556_v22  ;;  %v1893_v22 = vld [vmem:[%s2083_s2 + $0x1f0] sm:$0xff] }
 0x445   :  { %v1318_v58 = vpop.eup %1317 }
 0x446   :  { %v540_v35 = vpop.xlane.xlu2 %539  ;;  %v557_v8 = vmul.f32 %v1318_v58, %v1302_v43 }
 0x447   :  { %1319 = vrcp.f32 %v540_v35 }
 0x448   :  { %1232 = vmatmul.msk.f32.gmra.mxu2 %vm322_vm3, %v557_v8 }
 0x44d   :  { %v1320_v2 = vpop.eup %1319 }
 0x44e   :  { %v543_v38 = vpop.xlane.xlu1 %542  ;;  %v558_v41 = vmul.f32 %v1320_v2, %v1304_v49  ;;  %v1901_v2 = vld [vmem:[%s2083_s2 + $0x230] sm:$0xff] }
 0x44f   :  { %1321 = vrcp.f32 %v543_v38 }
 0x450   :  { %1233 = vmatmul.msk.f32.gmra.mxu2 %vm322_vm3, %v558_v41  ;;  %v1907_v41 = vld [vmem:[%s2083_s2 + $0x238] sm:$0xff] }
 0x455   :  { %v1322_v12 = vpop.eup %1321 }
 0x456   :  { %v559_v44 = vmul.f32 %v1322_v12, %v1306_v53 }
 0x458   :  { %1234 = vmatmul.msk.f32.gmra.mxu2 %vm322_vm3, %v559_v44 }
 0x4a3   :  { %v601_v32 = vpop.f32.mrf.mxu2 }
 0x4a4   :  { %v625_v40 = vmul.f32 %v601_v32, %v1699_v33 }
 0x4ab   :  { %v604_v16 = vpop.f32.mrf.mxu2 }
 0x4ac   :  { %v626_v0 = vmul.f32 %v604_v16, %v1708_v36 }
 0x4b3   :  { %v607_v46 = vpop.f32.mrf.mxu2 }
 0x4b4   :  { %v627_v62 = vmul.f32 %v607_v46, %v1715_v39  ;;  %v1913_v46 = vld [vmem:[%s2083_s2 + $0x248] sm:$0xff] }
 0x4bb   :  { %v610_v47 = vpop.f32.mrf.mxu2 }
 0x4bc   :  { %v628_v60 = vmul.f32 %v610_v47, %v1722_v42 }
 0x4c3   :  { %v613_v52 = vpop.f32.mrf.mxu2 }
 0x4c4   :  { %v629_v53 = vmul.f32 %v613_v52, %v1729_v45 }
 0x4cb   :  { %v616_v21 = vpop.f32.mrf.mxu2 }
 0x4cc   :  { %v630_v49 = vmul.f32 %v616_v21, %v1736_v48  ;;  %v1920_v21 = vld [vmem:[%s2083_s2 + $0x240] sm:$0xff] }
 0x4d3   :  { %v619_v43 = vpop.f32.mrf.mxu2 }
 0x4d4   :  { %v631_v34 = vmul.f32 %v619_v43, %v1743_v51 }
 0x4db   :  { %v622_v55 = vpop.f32.mrf.mxu2 }
 0x4dc   :  { %v632_v56 = vmul.f32 %v622_v55, %v1750_v54 }
 0x4de   :  { %647 = vmatpush.msra.mxu3 %v632_v56  ;;  %v1927_v56 = vld [vmem:[%s2083_s2 + $0x250] sm:$0xff] }
 0x4e0   :  { %648 = vmatpush.msra.mxu3 %v631_v34 }
 0x4e2   :  { %649 = vmatpush.msra.mxu3 %v630_v49 }
 0x4e4   :  { %650 = vmatpush.msra.mxu3 %v629_v53 }
 0x4e6   :  { %651 = vmatpush.msra.mxu3 %v628_v60 }
 0x4e8   :  { %652 = vmatpush.msra.mxu3 %v627_v62 }
 0x4ea   :  { %653 = vmatpush.msra.mxu3 %v626_v0 }
 0x4ec   :  { %654 = vmatpush.msra.mxu3 %v625_v40 }
 0x4ed   :  { %1235 = vmatmul.msk.f32.vlgmr.msra.gmra.mxu3 %vm402_vm4, %v1837_v59 }
 0x4ee   :  { %676 = vmatpush.msrb.mxu3 %v1842_v4 }
 0x4f0   :  { %677 = vmatpush.msrb.mxu3 %v1849_v63 }
 0x4f2   :  { %678 = vmatpush.msrb.mxu3 %v1855_v7 }
 0x4f4   :  { %679 = vmatpush.msrb.mxu3 %v1861_v9 }
 0x4f5   :  { %1236 = vmatmul.msk.f32.gmra.mxu3 %vm402_vm4, %v1866_v17 }
 0x4f6   :  { %680 = vmatpush.msrb.mxu3 %v1872_v3 }
 0x4f8   :  { %681 = vmatpush.msrb.mxu3 %v1880_v50 }
 0x4fa   :  { %682 = vmatpush.msrb.mxu3 %v1886_v20 }
 0x4fc   :  { %683 = vmatpush.msrb.mxu3 %v1893_v22 }
 0x570   :  { %v656_v58 = vpop.f32.mrf.mxu3 }
 0x571   :  { %1237 = vmatmul.msk.f32.vlgmr.msrb.gmra.mxu3 %vm402_vm4, %v656_v58 }
 0x578   :  { %v659_v35 = vpop.f32.mrf.mxu3 }
 0x579   :  { %1238 = vmatmul.msk.f32.gmra.mxu3 %vm402_vm4, %v659_v35 }
 0x5f4   :  { %v685_v8 = vpop.f32.mrf.mxu3 }
 0x5f5   :  { %v686_v38 = vadd.f32 %v685_v8, %v1901_v2 }
 0x5f7   :  { %v691_v44 = vmul.f32 0.5, %v686_v38 }
 0x5f9   :  { %v693_v47 = vadd.f32 %v691_v44, %v1594_v5  ;;  %v1934_v5 = vld [vmem:[%s2083_s2 + $0x258] sm:$0xff] }
 0x5fb   :  { %v695_v55 = vmul.f32 %v693_v47, %v1920_v21 }
 0x5fc   :  { %v688_v12 = vpop.f32.mrf.mxu3 }
 0x5fd   :  { %v689_v32 = vadd.f32 %v688_v12, %v1907_v41 }
 0x5ff   :  { %v692_v16 = vmul.f32 0.5, %v689_v32 }
 0x601   :  { %v694_v52 = vadd.f32 %v692_v16, %v1603_v10 }
 0x603   :  { %v696_v43 = vmul.f32 %v694_v52, %v1913_v46 }
 0x605   :  { %717 = vmatpush.msra.mxu3 %v696_v43 }
 0x607   :  { %718 = vmatpush.msra.mxu3 %v695_v55 }
 0x608   :  { %1239 = vmatmul.msk.f32.vlgmr.msra.gmra.mxu3 %vm322_vm3, %v1927_v56 }
 0x610   :  { %1240 = vmatmul.msk.f32.gmra.mxu3 %vm322_vm3, %v1934_v5 }
 0x68b   :  { %v1938_v10 = vpop.f32.mrf.mxu3 }
 0x68c   :  { %1241 = vmatmul.msk.f32.vlgmr.msrb.gmra.mxu0 %vm24_vm0, %v1938_v10  ;;  %1243 = vmatmul.msk.f32.vlgmr.msrb.gmra.mxu1 %vm24_vm0, %v1938_v10 }
 0x693   :  { %v1944_v34 = vpop.f32.mrf.mxu3 }
 0x694   :  { %1242 = vmatmul.msk.f32.gmra.mxu0 %vm24_vm0, %v1944_v34  ;;  %1244 = vmatmul.msk.f32.gmra.mxu1 %vm24_vm0, %v1944_v34 }
 0x709   :  { %v749_v49 = vpop.f32.mrf.mxu0  ;;  %v772_v53 = vpop.f32.mrf.mxu1 }
 0x70a   :  { %v750_v60 = vadd.f32 %v749_v49, %v1627_v18  ;;  %v773_v35 = vadd.f32 %v772_v53, %v1622_v15 }
 0x70c   :  { %829 = vrot.lane.b32.xlu0 %v750_v60, %s1381_s22 }
 0x711   :  { %v752_v62 = vpop.f32.mrf.mxu0  ;;  %v775_v0 = vpop.f32.mrf.mxu1 }
 0x712   :  { %v753_v40 = vadd.f32 %v752_v62, %v1612_v13  ;;  %v776_v58 = vadd.f32 %v775_v0, %v1617_v14 }
 0x714   :  { %1028 = vmatpush.msra.mxu1 %v776_v58  ;;  %831 = vrot.lane.b32.xlu2 %v753_v40, %s1381_s22 }
 0x715   :  { %792 = vmatpush.msrb.mxu3 %v753_v40 }
 0x716   :  { %1029 = vmatpush.msra.mxu1 %v773_v35 }
 0x717   :  { %793 = vmatpush.msrb.mxu3 %v750_v60 }
 0x718   :  { %1245 = vmatmul.msk.f32.vlgmr.msrb.gmra.mxu3 %vm322_vm3, %v1637_v23 }
 0x719   :  { %1279 = vmatpush.msra.mxu3 %v1842_v4 }
 0x71b   :  { %1280 = vmatpush.msra.mxu3 %v1849_v63 }
 0x71d   :  { %1281 = vmatpush.msra.mxu3 %v1855_v7 }
 0x71f   :  { %1282 = vmatpush.msra.mxu3 %v1861_v9 }
 0x720   :  { %1246 = vmatmul.msk.f32.gmra.mxu3 %vm322_vm3, %v1646_v24 }
 0x721   :  { %1283 = vmatpush.msra.mxu3 %v1872_v3 }
 0x723   :  { %1284 = vmatpush.msra.mxu3 %v1880_v50 }
 0x725   :  { %1285 = vmatpush.msra.mxu3 %v1886_v20 }
 0x727   :  { %1286 = vmatpush.msra.mxu3 %v1893_v22 }
 0x728   :  { %1247 = vmatmul.msk.f32.gmra.mxu3 %vm322_vm3, %v1653_v25 }
 0x730   :  { %1248 = vmatmul.msk.f32.gmra.mxu3 %vm322_vm3, %v1660_v26 }
 0x738   :  { %1249 = vmatmul.msk.f32.gmra.mxu3 %vm322_vm3, %v1667_v27 }
 0x740   :  { %1250 = vmatmul.msk.f32.gmra.mxu3 %vm322_vm3, %v1674_v28 }
 0x748   :  { %1251 = vmatmul.msk.f32.gmra.mxu3 %vm322_vm3, %v1681_v29 }
 0x750   :  { %1252 = vmatmul.msk.f32.gmra.mxu3 %vm322_vm3, %v1688_v30 }
 0x76e   :  { %v832_v13 = vpop.permute.xlu2 %831 }
 0x76f   :  { %1253 = vmatpush.xpose.msk.msra.mxu0 %vm402_vm4, %v832_v13 }
 0x77e   :  { %v830_v14 = vpop.permute.xlu0 %829 }
 0x77f   :  { %1254 = vmatpush.xpose.msk.msra.mxu0 %vm402_vm4, %v830_v14 }
 0x79b   :  { %v795_v15 = vpop.f32.mrf.mxu3 }
 0x79c   :  { %v819_v18 = vmul.f32 %v795_v15, %v1699_v33 }
 0x79e   :  { %1255 = vmatmul.msk.f32.vlgmr.msra.gmra.mxu0 %vm402_vm4, %v819_v18 }
 0x7a3   :  { %v798_v23 = vpop.f32.mrf.mxu3 }
 0x7a4   :  { %v820_v24 = vmul.f32 %v798_v23, %v1708_v36 }
 0x7a6   :  { %1256 = vmatmul.msk.f32.gmra.mxu0 %vm402_vm4, %v820_v24 }
 0x7ab   :  { %v801_v25 = vpop.f32.mrf.mxu3 }
 0x7ac   :  { %v821_v26 = vmul.f32 %v801_v25, %v1715_v39 }
 0x7ae   :  { %1257 = vmatmul.msk.f32.gmra.mxu0 %vm402_vm4, %v821_v26 }
 0x7b3   :  { %v804_v27 = vpop.f32.mrf.mxu3 }
 0x7b4   :  { %v822_v28 = vmul.f32 %v804_v27, %v1722_v42 }
 0x7b6   :  { %1258 = vmatmul.msk.f32.gmra.mxu0 %vm402_vm4, %v822_v28 }
 0x7bb   :  { %v807_v29 = vpop.f32.mrf.mxu3 }
 0x7bc   :  { %v823_v30 = vmul.f32 %v807_v29, %v1729_v45 }
 0x7be   :  { %1259 = vmatmul.msk.f32.gmra.mxu0 %vm402_vm4, %v823_v30 }
 0x7c3   :  { %v810_v8 = vpop.f32.mrf.mxu3 }
 0x7c4   :  { %v824_v38 = vmul.f32 %v810_v8, %v1736_v48 }
 0x7c6   :  { %1260 = vmatmul.msk.f32.gmra.mxu0 %vm402_vm4, %v824_v38 }
 0x7cb   :  { %v813_v12 = vpop.f32.mrf.mxu3 }
 0x7cc   :  { %v825_v44 = vmul.f32 %v813_v12, %v1743_v51 }
 0x7ce   :  { %1261 = vmatmul.msk.f32.gmra.mxu0 %vm402_vm4, %v825_v44 }
 0x7d3   :  { %v816_v32 = vpop.f32.mrf.mxu3 }
 0x7d4   :  { %v826_v16 = vmul.f32 %v816_v32, %v1750_v54 }
 0x7d6   :  { %1262 = vmatmul.msk.f32.gmra.mxu0 %vm402_vm4, %v826_v16 }
 0x81b   :  { %v878_v47 = vpop.f32.mrf.mxu0 }
 0x81c   :  { %v879_v52 = vadd.f32 %v878_v47, %v1757_v57 }
 0x81e   :  { %v902_v43 = vsel %vm322_vm3, %v879_v52, -inf }
 0x81f   :  { %903 = vmax.xlane.f32.xlu1 %v902_v43 }
 0x823   :  { %v881_v55 = vpop.f32.mrf.mxu0 }
 0x824   :  { %v882_v49 = vadd.f32 %v881_v55, %v1764_v61 }
 0x826   :  { %v905_v53 = vsel %vm322_vm3, %v882_v49, -inf }
 0x827   :  { %906 = vmax.xlane.f32.xlu1 %v905_v53 }
 0x82b   :  { %v884_v60 = vpop.f32.mrf.mxu0 }
 0x82c   :  { %v885_v62 = vadd.f32 %v884_v60, %v1771_v1 }
 0x82e   :  { %v908_v0 = vsel %vm322_vm3, %v885_v62, -inf }
 0x82f   :  { %909 = vmax.xlane.f32.xlu0 %v908_v0 }
 0x833   :  { %v887_v40 = vpop.f32.mrf.mxu0 }
 0x834   :  { %v888_v58 = vadd.f32 %v887_v40, %v1778_v6 }
 0x836   :  { %v911_v57 = vsel %vm322_vm3, %v888_v58, -inf }
 0x837   :  { %912 = vmax.xlane.f32.xlu1 %v911_v57 }
 0x83b   :  { %v890_v35 = vpop.f32.mrf.mxu0 }
 0x83c   :  { %v891_v13 = vadd.f32 %v890_v35, %v1785_v11 }
 0x83e   :  { %v914_v61 = vsel %vm322_vm3, %v891_v13, -inf }
 0x83f   :  { %915 = vmax.xlane.f32.xlu2 %v914_v61 }
 0x843   :  { %v893_v14 = vpop.f32.mrf.mxu0 }
 0x844   :  { %v894_v15 = vadd.f32 %v893_v14, %v1792_v19 }
 0x846   :  { %v917_v1 = vsel %vm322_vm3, %v894_v15, -inf }
 0x847   :  { %918 = vmax.xlane.f32.xlu1 %v917_v1 }
 0x84b   :  { %v896_v18 = vpop.f32.mrf.mxu0 }
 0x84c   :  { %v897_v23 = vadd.f32 %v896_v18, %v1799_v31 }
 0x84e   :  { %v920_v6 = vsel %vm322_vm3, %v897_v23, -inf }
 0x84f   :  { %921 = vmax.xlane.f32.xlu1 %v920_v6 }
 0x853   :  { %v899_v30 = vpop.f32.mrf.mxu0 }
 0x854   :  { %v900_v8 = vadd.f32 %v899_v30, %v1806_v37 }
 0x856   :  { %v923_v12 = vsel %vm322_vm3, %v900_v8, -inf }
 0x892   :  { %v904_v24 = vpop.xlane.xlu1 %903 }
 0x893   :  { %v926_v25 = vsub.f32 %v879_v52, %v904_v24 }
 0x895   :  { %v934_v26 = vmul.f32 1.442695, %v926_v25 }
 0x897   :  { %1323 = vpow2.f32 %v934_v26 }
 0x89a   :  { %v907_v11 = vpop.xlane.xlu1 %906 }
 0x89b   :  { %v927_v27 = vsub.f32 %v882_v49, %v907_v11 }
 0x89d   :  { %v1324_v28 = vpop.eup %1323  ;;  %v936_v29 = vmul.f32 1.442695, %v927_v27 }
 0x89e   :  { %v950_v19 = vsel %vm322_vm3, %v1324_v28, 0.0 }
 0x89f   :  { %1325 = vpow2.f32 %v936_v29  ;;  %951 = vadd.xlane.f32.xlu1 %v950_v19 }
 0x8a2   :  { %v910_v38 = vpop.xlane.xlu0 %909 }
 0x8a3   :  { %v928_v31 = vsub.f32 %v885_v62, %v910_v38 }
 0x8a5   :  { %v1326_v44 = vpop.eup %1325  ;;  %v938_v32 = vmul.f32 1.442695, %v928_v31 }
 0x8a6   :  { %v953_v16 = vsel %vm322_vm3, %v1326_v44, 0.0 }
 0x8a7   :  { %1327 = vpow2.f32 %v938_v32  ;;  %954 = vadd.xlane.f32.xlu0 %v953_v16  ;;  %924 = vmax.xlane.f32.xlu1 %v923_v12 }
 0x8aa   :  { %v913_v47 = vpop.xlane.xlu1 %912 }
 0x8ab   :  { %v929_v52 = vsub.f32 %v888_v58, %v913_v47 }
 0x8ad   :  { %v1328_v43 = vpop.eup %1327  ;;  %v940_v55 = vmul.f32 1.442695, %v929_v52 }
 0x8ae   :  { %v956_v49 = vsel %vm322_vm3, %v1328_v43, 0.0 }
 0x8af   :  { %1329 = vpow2.f32 %v940_v55  ;;  %957 = vadd.xlane.f32.xlu1 %v956_v49 }
 0x8b2   :  { %v916_v37 = vpop.xlane.xlu2 %915 }
 0x8b3   :  { %v930_v53 = vsub.f32 %v891_v13, %v916_v37 }
 0x8b5   :  { %v1330_v60 = vpop.eup %1329  ;;  %v942_v62 = vmul.f32 1.442695, %v930_v53 }
 0x8b6   :  { %v959_v0 = vsel %vm322_vm3, %v1330_v60, 0.0 }
 0x8b7   :  { %1331 = vpow2.f32 %v942_v62  ;;  %960 = vadd.xlane.f32.xlu2 %v959_v0 }
 0x8ba   :  { %v919_v40 = vpop.xlane.xlu1 %918 }
 0x8bb   :  { %v931_v57 = vsub.f32 %v894_v15, %v919_v40 }
 0x8bd   :  { %v1332_v35 = vpop.eup %1331  ;;  %v944_v61 = vmul.f32 1.442695, %v931_v57 }
 0x8be   :  { %v962_v58 = vsel %vm322_vm3, %v1332_v35, 0.0 }
 0x8bf   :  { %1333 = vpow2.f32 %v944_v61  ;;  %963 = vadd.xlane.f32.xlu0 %v962_v58 }
 0x8c2   :  { %v922_v14 = vpop.xlane.xlu1 %921 }
 0x8c3   :  { %v932_v1 = vsub.f32 %v897_v23, %v922_v14 }
 0x8c5   :  { %v1334_v18 = vpop.eup %1333  ;;  %v946_v6 = vmul.f32 1.442695, %v932_v1 }
 0x8c6   :  { %v965_v13 = vsel %vm322_vm3, %v1334_v18, 0.0 }
 0x8c7   :  { %1335 = vpow2.f32 %v946_v6  ;;  %966 = vadd.xlane.f32.xlu1 %v965_v13 }
 0x8cd   :  { %v1336_v24 = vpop.eup %1335 }
 0x8ce   :  { %v968_v25 = vsel %vm322_vm3, %v1336_v24, 0.0 }
 0x8cf   :  { %969 = vadd.xlane.f32.xlu2 %v968_v25 }
 0x912   :  { %v952_v26 = vpop.xlane.xlu1 %951 }
 0x913   :  { %1337 = vrcp.f32 %v952_v26 }
 0x919   :  { %v1338_v15 = vpop.eup %1337 }
 0x91a   :  { %v982_v11 = vmul.f32 %v1338_v15, %v1324_v28  ;;  %v955_v27 = vpop.xlane.xlu0 %954  ;;  %v925_v29 = vpop.xlane.xlu1 %924 }
 0x91b   :  { %1339 = vrcp.f32 %v955_v27  ;;  %v933_v30 = vsub.f32 %v900_v8, %v925_v29 }
 0x91c   :  { %1263 = vmatmul.msk.f32.vlgmr.msra.gmra.mxu1 %vm322_vm3, %v982_v11 }
 0x91d   :  { %v948_v23 = vmul.f32 1.442695, %v933_v30 }
 0x91f   :  { %1341 = vpow2.f32 %v948_v23 }
 0x921   :  { %v1340_v19 = vpop.eup %1339 }
 0x922   :  { %v958_v38 = vpop.xlane.xlu1 %957  ;;  %v983_v31 = vmul.f32 %v1340_v19, %v1326_v44 }
 0x923   :  { %1343 = vrcp.f32 %v958_v38 }
 0x924   :  { %1264 = vmatmul.msk.f32.gmra.mxu1 %vm322_vm3, %v983_v31 }
 0x925   :  { %v1342_v12 = vpop.eup %1341 }
 0x926   :  { %v971_v32 = vsel %vm322_vm3, %v1342_v12, 0.0 }
 0x927   :  { %972 = vadd.xlane.f32.xlu0 %v971_v32 }
 0x929   :  { %v1344_v16 = vpop.eup %1343 }
 0x92a   :  { %v961_v28 = vpop.xlane.xlu2 %960  ;;  %v984_v47 = vmul.f32 %v1344_v16, %v1328_v43 }
 0x92b   :  { %1345 = vrcp.f32 %v961_v28 }
 0x92c   :  { %1265 = vmatmul.msk.f32.gmra.mxu1 %vm322_vm3, %v984_v47 }
 0x931   :  { %v1346_v8 = vpop.eup %1345 }
 0x932   :  { %v964_v52 = vpop.xlane.xlu0 %963  ;;  %v985_v55 = vmul.f32 %v1346_v8, %v1330_v60 }
 0x933   :  { %1347 = vrcp.f32 %v964_v52 }
 0x934   :  { %1266 = vmatmul.msk.f32.gmra.mxu1 %vm322_vm3, %v985_v55 }
 0x939   :  { %v1348_v44 = vpop.eup %1347 }
 0x93a   :  { %v967_v49 = vpop.xlane.xlu1 %966  ;;  %v986_v37 = vmul.f32 %v1348_v44, %v1332_v35 }
 0x93b   :  { %1349 = vrcp.f32 %v967_v49 }
 0x93c   :  { %1267 = vmatmul.msk.f32.gmra.mxu1 %vm322_vm3, %v986_v37 }
 0x941   :  { %v1350_v53 = vpop.eup %1349 }
 0x942   :  { %v970_v62 = vpop.xlane.xlu2 %969  ;;  %v987_v0 = vmul.f32 %v1350_v53, %v1334_v18 }
 0x943   :  { %1351 = vrcp.f32 %v970_v62 }
 0x944   :  { %1268 = vmatmul.msk.f32.gmra.mxu1 %vm322_vm3, %v987_v0 }
 0x949   :  { %v1352_v43 = vpop.eup %1351 }
 0x94a   :  { %v988_v40 = vmul.f32 %v1352_v43, %v1336_v24 }
 0x94c   :  { %1269 = vmatmul.msk.f32.gmra.mxu1 %vm322_vm3, %v988_v40 }
 0x999   :  { %v1031_v35 = vpop.f32.mrf.mxu1 }
 0x99a   :  { %v973_v60 = vpop.xlane.xlu0 %972 }
 0x99b   :  { %1353 = vrcp.f32 %v973_v60 }
 0x9a1   :  { %v1354_v57 = vpop.eup %1353  ;;  %v1034_v58 = vpop.f32.mrf.mxu1 }
 0x9a2   :  { %v989_v61 = vmul.f32 %v1354_v57, %v1342_v12  ;;  %v1056_v30 = vmul.f32 %v1034_v58, %v1708_v36 }
 0x9a4   :  { %1270 = vmatmul.msk.f32.gmra.mxu1 %vm322_vm3, %v989_v61 }
 0x9a9   :  { %v1037_v14 = vpop.f32.mrf.mxu1 }
 0x9aa   :  { %v1057_v29 = vmul.f32 %v1037_v14, %v1715_v39 }
 0x9b1   :  { %v1040_v1 = vpop.f32.mrf.mxu1 }
 0x9b2   :  { %v1058_v27 = vmul.f32 %v1040_v1, %v1722_v42 }
 0x9b9   :  { %v1043_v6 = vpop.f32.mrf.mxu1 }
 0x9ba   :  { %v1059_v11 = vmul.f32 %v1043_v6, %v1729_v45 }
 0x9c1   :  { %v1046_v13 = vpop.f32.mrf.mxu1 }
 0x9c2   :  { %v1060_v15 = vmul.f32 %v1046_v13, %v1736_v48 }
 0x9c9   :  { %v1049_v18 = vpop.f32.mrf.mxu1 }
 0x9ca   :  { %v1061_v24 = vmul.f32 %v1049_v18, %v1743_v51 }
 0xa21   :  { %v1052_v25 = vpop.f32.mrf.mxu1 }
 0xa22   :  { %v1062_v26 = vmul.f32 %v1052_v25, %v1750_v54  ;;  %v1055_v54 = vmul.f32 %v1031_v35, %v1699_v33 }
 0xa24   :  { %1071 = vmatpush.msrb.mxu2 %v1062_v26 }
 0xa26   :  { %1072 = vmatpush.msrb.mxu2 %v1061_v24 }
 0xa28   :  { %1073 = vmatpush.msrb.mxu2 %v1060_v15 }
 0xa2a   :  { %1074 = vmatpush.msrb.mxu2 %v1059_v11 }
 0xa2c   :  { %1075 = vmatpush.msrb.mxu2 %v1058_v27 }
 0xa2e   :  { %1076 = vmatpush.msrb.mxu2 %v1057_v29 }
 0xa30   :  { %1077 = vmatpush.msrb.mxu2 %v1056_v30 }
 0xa32   :  { %1078 = vmatpush.msrb.mxu2 %v1055_v54 }
 0xa33   :  { %1271 = vmatmul.msk.f32.vlgmr.msrb.gmra.mxu2 %vm402_vm4, %v1837_v59 }
 0xa34   :  { %1100 = vmatpush.msra.mxu2 %v1842_v4 }
 0xa36   :  { %1101 = vmatpush.msra.mxu2 %v1849_v63 }
 0xa38   :  { %1102 = vmatpush.msra.mxu2 %v1855_v7 }
 0xa3a   :  { %1103 = vmatpush.msra.mxu2 %v1861_v9 }
 0xa3b   :  { %1272 = vmatmul.msk.f32.gmra.mxu2 %vm402_vm4, %v1866_v17  ;;  %v1147_v17 = vld [vmem:[%s2083_s2 + $0x278] sm:$0xff] }
 0xa3c   :  { %1104 = vmatpush.msra.mxu2 %v1872_v3  ;;  %v1146_v3 = vld [vmem:[%s2083_s2 + $0x270] sm:$0xff] }
 0xa3e   :  { %1105 = vmatpush.msra.mxu2 %v1880_v50  ;;  %v1145_v50 = vld [vmem:[%s2083_s2 + $0x268] sm:$0xff] }
 0xa40   :  { %1106 = vmatpush.msra.mxu2 %v1886_v20  ;;  %v1144_v20 = vld [vmem:[%s2083_s2 + $0x260] sm:$0xff]  ;;  %s1185_s2 = sshll.u32 %s2084_s3, 4  ;;  %s1186_s2 = int_to_ptr.hbm [resolvable:$true] %s1185_s2 }
 0xa42   :  { %1107 = vmatpush.msra.mxu2 %v1893_v22 }
 0xab6   :  { %v1080_v33 = vpop.f32.mrf.mxu2 }
 0xab7   :  { %1273 = vmatmul.msk.f32.vlgmr.msra.gmra.mxu2 %vm402_vm4, %v1080_v33 }
 0xabe   :  { %v1083_v36 = vpop.f32.mrf.mxu2 }
 0xabf   :  { %1274 = vmatmul.msk.f32.vlgmr.msra.gmra.mxu3 %vm402_vm4, %v1083_v36 }
 0xb3a   :  { %v1109_v39 = vpop.f32.mrf.mxu2 }
 0xb3b   :  { %v1110_v42 = vadd.f32 %v1109_v39, %v1901_v2 }
 0xb3d   :  { %v1115_v48 = vmul.f32 0.5, %v1110_v42 }
 0xb3f   :  { %v1117_v4 = vadd.f32 %v1115_v48, %v1938_v10 }
 0xb41   :  { %v1119_v9 = vmul.f32 %v1117_v4, %v1920_v21 }
 0xb42   :  { %v1112_v45 = vpop.f32.mrf.mxu3 }
 0xb43   :  { %v1113_v51 = vadd.f32 %v1112_v45, %v1907_v41 }
 0xb45   :  { %v1116_v59 = vmul.f32 0.5, %v1113_v51 }
 0xb47   :  { %v1118_v63 = vadd.f32 %v1116_v59, %v1944_v34 }
 0xb49   :  { %v1120_v7 = vmul.f32 %v1118_v63, %v1913_v46 }
 0xb4b   :  { %1135 = vmatpush.msrb.mxu2 %v1120_v7 }
 0xb4d   :  { %1136 = vmatpush.msrb.mxu2 %v1119_v9 }
 0xb4e   :  { %1275 = vmatmul.msk.f32.vlgmr.msrb.gmra.mxu2 %vm322_vm3, %v1927_v56 }
 0xb4f   :  { %1166 = vmatpush.msra.mxu2 %v1147_v17 }
 0xb51   :  { %1167 = vmatpush.msra.mxu2 %v1146_v3 }
 0xb53   :  { %1168 = vmatpush.msra.mxu2 %v1145_v50 }
 0xb55   :  { %1169 = vmatpush.msra.mxu2 %v1144_v20 }
 0xb56   :  { %1276 = vmatmul.msk.f32.gmra.mxu2 %vm322_vm3, %v1934_v5 }
 0xbd1   :  { %v1138_v22 = vpop.f32.mrf.mxu2 }
 0xbd2   :  { %1277 = vmatmul.msk.f32.vlgmr.msra.gmra.mxu2 %vm24_vm0, %v1138_v22 }
 0xbd9   :  { %v1141_v2 = vpop.f32.mrf.mxu2 }
 0xbda   :  { %1278 = vmatmul.msk.f32.gmra.mxu2 %vm24_vm0, %v1141_v2 }
 0xc55   :  { %v1171_v41 = vpop.f32.mrf.mxu2 }
 0xc56   :  { %1177 = vst.msk [vmem:[#allocation2] sm:$0xff] %vm24_vm0, %v1171_v41 }
 0xc5d   :  { %v1174_v46 = vpop.f32.mrf.mxu2 }
 0xc5e   :  { %1178 = vst.msk [vmem:[#allocation2 + $0x8] sm:$0xff] %vm24_vm0, %v1174_v46 }
 0xc5f   :  { %1191 = dma.vmem_to_hbm [thread:$0]  %s1184_s26, 256, %s1186_s2, [#allocation3], %s1383_s29, %s1383_s29, %s1384_s30  }
 0xc60   :  { %1379 = dma.done.wait [#allocation3], 256  }
 0xc61   :  { %1380 = vsyncadd [#allocation3], 4294967040 }
 0xc62   :  { %1196 = vsyncpa [#allocation3], 1 }

</bundles_post_ra>
